<compile_context>
chip_gen: v6e
topology: v6e:2x2x1
jax: 0.10.0
libtpu: 0.0.40
codegen_flags: <defaults>
</compile_context>

<pallas_src>
import numpy as np
import jax
import jax.numpy as jnp
from jax.experimental import pallas as pl
from jax.experimental.pallas import tpu as pltpu


def _round_up(v, m):
    return (v + m - 1) // m * m


def _vmem_limit_bytes(x_blk_bytes, out_blk_bytes, w_bytes):
    # 2x for double-buffered pipelined operands (and, conservatively, the
    # constant-index weights), plus slack for compiler scratch.
    need = 2 * (x_blk_bytes + out_blk_bytes) + 2 * w_bytes + (2 << 20)
    # Floor keeps tiny problems comfortable; allow growth up to 128 MiB (v5e /
    # v6e physical).  On v7x (64 MiB) callers should shrink t_block /
    # batch_block so `need` stays under ~48 MiB.
    return int(min(max(need, 16 << 20), 128 << 20))


# ---------------------------------------------------------------------------
# Kernel 1: full forward (returns pooled, norm_att, cla) — whole-T blocks.
# ---------------------------------------------------------------------------
def _make_full_kernel(n_out_p, batch_block, activation, compute_dtype):
    def kernel(x_ref, w_ref, b_ref, out_ref, natt_ref, cla_ref):
        w = w_ref[...]                      # (2*n_out_p, n_in), resident
        bias = b_ref[...]                   # (2*n_out_p, 1)
        if compute_dtype is not None:
            w = w.astype(compute_dtype)

        # Unrolled loop over the folded batch elements (amortizes grid-step
        # overhead; each iteration is one stacked MXU matmul).
        for bi in range(batch_block):
            xb = x_ref[bi]                  # (n_in, T)
            if compute_dtype is not None:
                xb = xb.astype(compute_dtype)

            # Both 1x1 convs as one stacked matmul; f32 accumulation.
            both = jnp.dot(w, xb, preferred_element_type=jnp.float32) + bias
            # n_out_p is a multiple of 8 -> both slices are free tile views.
            att = jnp.clip(both[:n_out_p], -10.0, 10.0)
            cla = both[n_out_p:]

            # Softmax over T.  No max-subtraction needed (att in [-10, 10]);
            # reciprocal on the (n_out_p, 1) column goes to the EUP.
            e = jnp.exp(att)
            s = jnp.sum(e, axis=-1, keepdims=True)
            inv = pl.reciprocal(s, approx=True)
            norm_att = e * inv

            if activation == 'sigmoid':
                cla = jax.nn.sigmoid(cla)
            # activation == 'linear' -> identity.

            natt_ref[bi] = norm_att.astype(natt_ref.dtype)
            cla_ref[bi] = cla.astype(cla_ref.dtype)
            out_ref[bi] = jnp.sum(norm_att * cla, axis=-1, keepdims=True)

    return kernel


# ---------------------------------------------------------------------------
# Kernel 2: pooled-only forward — T tiled, online accumulation, no (n_out, T)
# HBM writes at all.
# ---------------------------------------------------------------------------
def _make_pooled_kernel(n_out_p, batch_block, activation, compute_dtype):
    def kernel(x_ref, w_ref, b_ref, out_ref, s_acc, n_acc):
        it = pl.program_id(1)

        @pl.when(it == 0)
        def _init():
            s_acc[...] = jnp.zeros_like(s_acc)
            n_acc[...] = jnp.zeros_like(n_acc)

        w = w_ref[...]
        bias = b_ref[...]
        if compute_dtype is not None:
            w = w.astype(compute_dtype)

        for bi in range(batch_block):
            xb = x_ref[bi]                  # (n_in, t_block)
            if compute_dtype is not None:
                xb = xb.astype(compute_dtype)

            both = jnp.dot(w, xb, preferred_element_type=jnp.float32) + bias
            att = jnp.clip(both[:n_out_p], -10.0, 10.0)
            cla = both[n_out_p:]
            if activation == 'sigmoid':
                cla = jax.nn.sigmoid(cla)

            e = jnp.exp(att)                # safe: att clamped to [-10, 10]
            s_acc[bi] += jnp.sum(e, axis=-1, keepdims=True)
            n_acc[bi] += jnp.sum(e * cla, axis=-1, keepdims=True)

        @pl.when(it == pl.num_programs(1) - 1)
        def _finalize():
            inv = pl.reciprocal(s_acc[...], approx=True)
            out_ref[...] = (n_acc[...] * inv).astype(out_ref.dtype)

    return kernel


# ---------------------------------------------------------------------------
# Wrapper
# ---------------------------------------------------------------------------
def att_block_forward(x, att_w, att_b, cla_w, cla_b, *,
                      activation='linear',
                      return_intermediates=True,
                      intermediates_dtype=jnp.float32,
                      batch_block=1,
                      t_block=None,
                      compute_dtype=None):
    """x: (B, n_in, T); att_w/cla_w: (n_out, n_in); att_b/cla_b: (n_out,).

    return_intermediates=True  -> (pooled (B, n_out), norm_att, cla)  [module semantics]
    return_intermediates=False -> pooled (B, n_out) only, T tiled, no big HBM writes.
    """
    assert activation in ('linear', 'sigmoid')
    b, n_in, t = x.shape
    n_out = att_w.shape[0]

    # Pad each conv's output rows to a sublane-tile (8) multiple so that the
    # in-kernel split of the stacked matmul result lands on a tile boundary.
    n_out_p = _round_up(n_out, 8)
    pad = n_out_p - n_out
    if pad:
        att_w = jnp.pad(att_w, ((0, pad), (0, 0)))
        cla_w = jnp.pad(cla_w, ((0, pad), (0, 0)))
        att_b = jnp.pad(att_b, ((0, pad),))
        cla_b = jnp.pad(cla_b, ((0, pad),))

    # Stack the two 1x1-conv weights -> a single MXU matmul per batch element.
    w = jnp.concatenate([att_w, cla_w], axis=0)                    # (2*n_out_p, n_in)
    bias = jnp.concatenate([att_b, cla_b], axis=0).reshape(2 * n_out_p, 1)

    if batch_block < 1 or b % batch_block != 0:
        batch_block = 1
    bb = batch_block

    x_isz = x.dtype.itemsize
    w_bytes = (w.size + bias.size) * 4
    flops = 2 * b * (2 * n_out_p) * n_in * t
    transc = b * n_out_p * t * (2 if activation == 'sigmoid' else 1)

    if return_intermediates:
        inter_isz = np.dtype(intermediates_dtype).itemsize
        x_blk = bb * n_in * t * x_isz
        out_blk = 2 * bb * n_out_p * t * inter_isz + bb * n_out_p * 4
        bytes_acc = (x.size * x_isz + w_bytes
                     + 2 * b * n_out_p * t * inter_isz + b * n_out_p * 4)

        out3, norm_att, cla = pl.pallas_call(
            _make_full_kernel(n_out_p, bb, activation, compute_dtype),
            out_shape=(jax.ShapeDtypeStruct((b, n_out_p, 1), jnp.float32),
                       jax.ShapeDtypeStruct((b, n_out_p, t), intermediates_dtype),
                       jax.ShapeDtypeStruct((b, n_out_p, t), intermediates_dtype)),
            grid=(b // bb,),
            in_specs=[
                pl.BlockSpec((bb, n_in, t), lambda i: (i, 0, 0)),       # x tile
                pl.BlockSpec((2 * n_out_p, n_in), lambda i: (0, 0)),    # weights (resident)
                pl.BlockSpec((2 * n_out_p, 1), lambda i: (0, 0)),       # biases  (resident)
            ],
            out_specs=(
                pl.BlockSpec((bb, n_out_p, 1), lambda i: (i, 0, 0)),    # pooled
                pl.BlockSpec((bb, n_out_p, t), lambda i: (i, 0, 0)),    # norm_att
                pl.BlockSpec((bb, n_out_p, t), lambda i: (i, 0, 0)),    # cla
            ),
            compiler_params=pltpu.CompilerParams(
                dimension_semantics=("parallel",),
                vmem_limit_bytes=_vmem_limit_bytes(x_blk, out_blk, w_bytes)),
            cost_estimate=pl.CostEstimate(flops=int(flops),
                                          transcendentals=int(transc),
                                          bytes_accessed=int(bytes_acc)),
        )(x, w, bias)
        return out3[:, :n_out, 0], norm_att[:, :n_out], cla[:, :n_out]

    # ---------------- pooled-only, T-tiled path ----------------
    if t_block is None:
        for cand in (1024, 512, 256, 128):
            if t % cand == 0:
                t_block = cand
                break
        else:
            t_block = t
    elif t_block != t and (t % t_block != 0 or t_block % 128 != 0):
        t_block = t
    tb = t_block

    x_blk = bb * n_in * tb * x_isz
    out_blk = bb * n_out_p * 4
    bytes_acc = x.size * x_isz + w_bytes + b * n_out_p * 4

    out3 = pl.pallas_call(
        _make_pooled_kernel(n_out_p, bb, activation, compute_dtype),
        out_shape=jax.ShapeDtypeStruct((b, n_out_p, 1), jnp.float32),
        grid=(b // bb, t // tb),
        in_specs=[
            pl.BlockSpec((bb, n_in, tb), lambda i, j: (i, 0, j)),
            pl.BlockSpec((2 * n_out_p, n_in), lambda i, j: (0, 0)),
            pl.BlockSpec((2 * n_out_p, 1), lambda i, j: (0, 0)),
        ],
        out_specs=pl.BlockSpec((bb, n_out_p, 1), lambda i, j: (i, 0, 0)),
        scratch_shapes=[pltpu.VMEM((bb, n_out_p, 1), jnp.float32),   # softmax denom
                        pltpu.VMEM((bb, n_out_p, 1), jnp.float32)],  # weighted numerator
        compiler_params=pltpu.CompilerParams(
            dimension_semantics=("parallel", "arbitrary"),
            vmem_limit_bytes=_vmem_limit_bytes(x_blk, out_blk, w_bytes)),
        cost_estimate=pl.CostEstimate(flops=int(flops),
                                      transcendentals=int(transc),
                                      bytes_accessed=int(bytes_acc)),
    )(x, w, bias)
    return out3[:, :n_out, 0]


# ---------------------------------------------------------------------------
# Deterministic parameter init (matches AttBlock.init_weights):
#   xavier_uniform_ on both Conv1d weights, biases filled with 0.
# ---------------------------------------------------------------------------
def init_attblock_params(key, n_in, n_out):
    k1, k2 = jax.random.split(key)
    limit = float(np.sqrt(6.0 / (n_in + n_out)))   # Conv1d(k=1): fan_in=n_in, fan_out=n_out
    att_w = jax.random.uniform(k1, (n_out, n_in), jnp.float32, -limit, limit)
    cla_w = jax.random.uniform(k2, (n_out, n_in), jnp.float32, -limit, limit)
    att_b = jnp.zeros((n_out,), jnp.float32)
    cla_b = jnp.zeros((n_out,), jnp.float32)
    return att_w, att_b, cla_w, cla_b


def _reference(x, att_w, att_b, cla_w, cla_b, activation):
    hp = jax.lax.Precision.HIGHEST
    att = jnp.einsum('oi,bit->bot', att_w, x, precision=hp) + att_b[None, :, None]
    norm_att = jax.nn.softmax(jnp.clip(att, -10.0, 10.0), axis=-1)
    cla = jnp.einsum('oi,bit->bot', cla_w, x, precision=hp) + cla_b[None, :, None]
    if activation == 'sigmoid':
        cla = jax.nn.sigmoid(cla)
    return jnp.sum(norm_att * cla, axis=2), norm_att, cla


# ---------------------------------------------------------------------------
if __name__ == "__main__":
    fwd = jax.jit(att_block_forward,
                  static_argnames=('activation', 'return_intermediates',
                                   'intermediates_dtype', 'batch_block',
                                   't_block', 'compute_dtype'))

    key = jax.random.PRNGKey(0)
    ATOL = RTOL = 2e-3   # approx-reciprocal softmax denominator vs exact reference

    # (B, n_in, n_out, T, activation, batch_block)
    configs = [
        (2, 32, 8, 128, 'linear', 2),    # fold 2 batch elems per grid step
        (2, 32, 8, 128, 'sigmoid', 1),
        (2, 32, 6, 256, 'sigmoid', 1),   # n_out % 8 != 0 -> exercises row padding
    ]

    for (B, N_IN, N_OUT, T, act, bb) in configs:
        key, pkey, xkey = jax.random.split(key, 3)
        att_w, att_b, cla_w, cla_b = init_attblock_params(pkey, N_IN, N_OUT)
        x = jax.random.normal(xkey, (B, N_IN, T), jnp.float32)

        out, norm_att, cla = fwd(x, att_w, att_b, cla_w, cla_b,
                                 activation=act, batch_block=bb)
        jax.block_until_ready((out, norm_att, cla))

        out_r, natt_r, cla_r = _reference(x, att_w, att_b, cla_w, cla_b, act)
        assert out.shape == (B, N_OUT), out.shape
        assert norm_att.shape == (B, N_OUT, T), norm_att.shape
        assert cla.shape == (B, N_OUT, T), cla.shape
        assert bool(jnp.all(jnp.isfinite(out)))
        np.testing.assert_allclose(np.asarray(out), np.asarray(out_r),
                                   atol=ATOL, rtol=RTOL)
        np.testing.assert_allclose(np.asarray(norm_att), np.asarray(natt_r),
                                   atol=ATOL, rtol=RTOL)
        np.testing.assert_allclose(np.asarray(cla), np.asarray(cla_r),
                                   atol=ATOL, rtol=RTOL)

    # Pooled-only, T-tiled path (no norm_att / cla HBM writes).
    B, N_IN, N_OUT, T = 2, 32, 8, 256
    key, pkey, xkey = jax.random.split(key, 3)
    att_w, att_b, cla_w, cla_b = init_attblock_params(pkey, N_IN, N_OUT)
    x = jax.random.normal(xkey, (B, N_IN, T), jnp.float32)

    out_only = fwd(x, att_w, att_b, cla_w, cla_b,
                   activation='sigmoid', return_intermediates=False,
                   batch_block=1, t_block=128)     # forces 2 T tiles
    jax.block_until_ready(out_only)
    out_r, _, _ = _reference(x, att_w, att_b, cla_w, cla_b, 'sigmoid')
    assert out_only.shape == (B, N_OUT), out_only.shape
    assert bool(jnp.all(jnp.isfinite(out_only)))
    np.testing.assert_allclose(np.asarray(out_only), np.asarray(out_r),
                               atol=ATOL, rtol=RTOL)

    print("KERNEL_OK")
</pallas_src>

<mosaic_0001>
module attributes {stable_mosaic.version = 11 : i64} {
  func.func @kernel(%arg0: i32, %arg1: memref<2x32x128xf32, #tpu.memory_space<vmem>>, %arg2: memref<16x32xf32, #tpu.memory_space<vmem>>, %arg3: memref<16x1xf32, #tpu.memory_space<vmem>>, %arg4: memref<2x8x1xf32, #tpu.memory_space<vmem>>, %arg5: memref<2x8x128xf32, #tpu.memory_space<vmem>>, %arg6: memref<2x8x128xf32, #tpu.memory_space<vmem>>) attributes {dimension_semantics = [#tpu.dimension_semantics<parallel>], iteration_bounds = array<i64: 1>, scalar_prefetch = 0 : i64, scratch_operands = 0 : i64, tpu.core_type = #tpu.core_type<tc>, window_params = [{transform_indices = @transform_0, window_bounds = array<i64: 2, 32, 128>}, {pipeline_mode = #tpu.pipeline_mode<synchronous>, transform_indices = @transform_1, window_bounds = array<i64: 16, 32>}, {pipeline_mode = #tpu.pipeline_mode<synchronous>, transform_indices = @transform_2, window_bounds = array<i64: 16, 1>}, {transform_indices = @transform_3, window_bounds = array<i64: 2, 8, 1>}, {transform_indices = @transform_4, window_bounds = array<i64: 2, 8, 128>}, {transform_indices = @transform_5, window_bounds = array<i64: 2, 8, 128>}]} {
    %c0 = arith.constant 0 : index
    %c0_0 = arith.constant 0 : index
    %0 = vector.load %arg2[%c0, %c0_0] : memref<16x32xf32, #tpu.memory_space<vmem>>, vector<16x32xf32>
    %c0_1 = arith.constant 0 : index
    %c0_2 = arith.constant 0 : index
    %1 = vector.load %arg3[%c0_1, %c0_2] : memref<16x1xf32, #tpu.memory_space<vmem>>, vector<16x1xf32>
    %c0_3 = arith.constant 0 : index
    %c0_4 = arith.constant 0 : index
    %c0_5 = arith.constant 0 : index
    %2 = vector.load %arg1[%c0_3, %c0_4, %c0_5] : memref<2x32x128xf32, #tpu.memory_space<vmem>>, vector<1x32x128xf32>
    %3 = vector.shape_cast %2 : vector<1x32x128xf32> to vector<32x128xf32>
    %cst = arith.constant dense<0.000000e+00> : vector<16x128xf32>
    %4 = tpu.matmul %0, %3, %cst {dimension_numbers = #tpu.dot_dimension_numbers<[1], [0], [0], [1], [0, 0, 1, 1], [], []>} : vector<16x32xf32>, vector<32x128xf32>, vector<16x128xf32> -> vector<16x128xf32>
    %5 = vector.broadcast %1 : vector<16x1xf32> to vector<16x128xf32>
    %6 = arith.addf %4, %5 : vector<16x128xf32>
    %7 = vector.extract_strided_slice %6 {offsets = [0, 0], sizes = [8, 128], strides = [1, 1]} : vector<16x128xf32> to vector<8x128xf32>
    %cst_6 = arith.constant -1.000000e+01 : f32
    %cst_7 = arith.constant 1.000000e+01 : f32
    %8 = vector.broadcast %cst_6 : f32 to vector<8x128xf32>
    %9 = arith.maximumf %8, %7 : vector<8x128xf32>
    %10 = vector.broadcast %cst_7 : f32 to vector<8x128xf32>
    %11 = arith.minimumf %10, %9 : vector<8x128xf32>
    %12 = vector.extract_strided_slice %6 {offsets = [8, 0], sizes = [8, 128], strides = [1, 1]} : vector<16x128xf32> to vector<8x128xf32>
    %13 = math.exp %11 : vector<8x128xf32>
    %cst_8 = arith.constant dense<0.000000e+00> : vector<8xf32>
    %14 = vector.multi_reduction <add>, %13, %cst_8 [1] : vector<8x128xf32> to vector<8xf32>
    %15 = vector.shape_cast %14 : vector<8xf32> to vector<8x1xf32>
    %16 = tpu.reciprocal %15 {approx = true} : vector<8x1xf32> -> vector<8x1xf32>
    %17 = vector.broadcast %16 : vector<8x1xf32> to vector<8x128xf32>
    %18 = arith.mulf %13, %17 : vector<8x128xf32>
    %c0_9 = arith.constant 0 : index
    %c0_10 = arith.constant 0 : index
    %c0_11 = arith.constant 0 : index
    %19 = vector.load %arg5[%c0_9, %c0_10, %c0_11] : memref<2x8x128xf32, #tpu.memory_space<vmem>>, vector<1x8x128xf32>
    %20 = vector.shape_cast %19 : vector<1x8x128xf32> to vector<8x128xf32>
    %21 = vector.shape_cast %18 : vector<8x128xf32> to vector<1x8x128xf32>
    tpu.vector_store %arg5[%c0_9, %c0_10, %c0_11], %21 {strides = array<i32>} : memref<2x8x128xf32, #tpu.memory_space<vmem>>, vector<1x8x128xf32>,
    %c0_12 = arith.constant 0 : index
    %c0_13 = arith.constant 0 : index
    %c0_14 = arith.constant 0 : index
    %22 = vector.load %arg6[%c0_12, %c0_13, %c0_14] : memref<2x8x128xf32, #tpu.memory_space<vmem>>, vector<1x8x128xf32>
    %23 = vector.shape_cast %22 : vector<1x8x128xf32> to vector<8x128xf32>
    %24 = vector.shape_cast %12 : vector<8x128xf32> to vector<1x8x128xf32>
    tpu.vector_store %arg6[%c0_12, %c0_13, %c0_14], %24 {strides = array<i32>} : memref<2x8x128xf32, #tpu.memory_space<vmem>>, vector<1x8x128xf32>,
    %25 = arith.mulf %18, %12 : vector<8x128xf32>
    %cst_15 = arith.constant dense<0.000000e+00> : vector<8xf32>
    %26 = vector.multi_reduction <add>, %25, %cst_15 [1] : vector<8x128xf32> to vector<8xf32>
    %27 = vector.shape_cast %26 : vector<8xf32> to vector<8x1xf32>
    %c0_16 = arith.constant 0 : index
    %c0_17 = arith.constant 0 : index
    %c0_18 = arith.constant 0 : index
    %28 = vector.load %arg4[%c0_16, %c0_17, %c0_18] : memref<2x8x1xf32, #tpu.memory_space<vmem>>, vector<1x8x1xf32>
    %29 = vector.shape_cast %28 : vector<1x8x1xf32> to vector<8x1xf32>
    %30 = vector.shape_cast %27 : vector<8x1xf32> to vector<1x8x1xf32>
    tpu.vector_store %arg4[%c0_16, %c0_17, %c0_18], %30 {strides = array<i32>} : memref<2x8x1xf32, #tpu.memory_space<vmem>>, vector<1x8x1xf32>,
    %c1 = arith.constant 1 : index
    %c0_19 = arith.constant 0 : index
    %c0_20 = arith.constant 0 : index
    %31 = vector.load %arg1[%c1, %c0_19, %c0_20] : memref<2x32x128xf32, #tpu.memory_space<vmem>>, vector<1x32x128xf32>
    %32 = vector.shape_cast %31 : vector<1x32x128xf32> to vector<32x128xf32>
    %cst_21 = arith.constant dense<0.000000e+00> : vector<16x128xf32>
    %33 = tpu.matmul %0, %32, %cst_21 {dimension_numbers = #tpu.dot_dimension_numbers<[1], [0], [0], [1], [0, 0, 1, 1], [], []>} : vector<16x32xf32>, vector<32x128xf32>, vector<16x128xf32> -> vector<16x128xf32>
    %34 = vector.broadcast %1 : vector<16x1xf32> to vector<16x128xf32>
    %35 = arith.addf %33, %34 : vector<16x128xf32>
    %36 = vector.extract_strided_slice %35 {offsets = [0, 0], sizes = [8, 128], strides = [1, 1]} : vector<16x128xf32> to vector<8x128xf32>
    %cst_22 = arith.constant -1.000000e+01 : f32
    %cst_23 = arith.constant 1.000000e+01 : f32
    %37 = vector.broadcast %cst_22 : f32 to vector<8x128xf32>
    %38 = arith.maximumf %37, %36 : vector<8x128xf32>
    %39 = vector.broadcast %cst_23 : f32 to vector<8x128xf32>
    %40 = arith.minimumf %39, %38 : vector<8x128xf32>
    %41 = vector.extract_strided_slice %35 {offsets = [8, 0], sizes = [8, 128], strides = [1, 1]} : vector<16x128xf32> to vector<8x128xf32>
    %42 = math.exp %40 : vector<8x128xf32>
    %cst_24 = arith.constant dense<0.000000e+00> : vector<8xf32>
    %43 = vector.multi_reduction <add>, %42, %cst_24 [1] : vector<8x128xf32> to vector<8xf32>
    %44 = vector.shape_cast %43 : vector<8xf32> to vector<8x1xf32>
    %45 = tpu.reciprocal %44 {approx = true} : vector<8x1xf32> -> vector<8x1xf32>
    %46 = vector.broadcast %45 : vector<8x1xf32> to vector<8x128xf32>
    %47 = arith.mulf %42, %46 : vector<8x128xf32>
    %c1_25 = arith.constant 1 : index
    %c0_26 = arith.constant 0 : index
    %c0_27 = arith.constant 0 : index
    %48 = vector.load %arg5[%c1_25, %c0_26, %c0_27] : memref<2x8x128xf32, #tpu.memory_space<vmem>>, vector<1x8x128xf32>
    %49 = vector.shape_cast %48 : vector<1x8x128xf32> to vector<8x128xf32>
    %50 = vector.shape_cast %47 : vector<8x128xf32> to vector<1x8x128xf32>
    tpu.vector_store %arg5[%c1_25, %c0_26, %c0_27], %50 {strides = array<i32>} : memref<2x8x128xf32, #tpu.memory_space<vmem>>, vector<1x8x128xf32>,
    %c1_28 = arith.constant 1 : index
    %c0_29 = arith.constant 0 : index
    %c0_30 = arith.constant 0 : index
    %51 = vector.load %arg6[%c1_28, %c0_29, %c0_30] : memref<2x8x128xf32, #tpu.memory_space<vmem>>, vector<1x8x128xf32>
    %52 = vector.shape_cast %51 : vector<1x8x128xf32> to vector<8x128xf32>
    %53 = vector.shape_cast %41 : vector<8x128xf32> to vector<1x8x128xf32>
    tpu.vector_store %arg6[%c1_28, %c0_29, %c0_30], %53 {strides = array<i32>} : memref<2x8x128xf32, #tpu.memory_space<vmem>>, vector<1x8x128xf32>,
    %54 = arith.mulf %47, %41 : vector<8x128xf32>
    %cst_31 = arith.constant dense<0.000000e+00> : vector<8xf32>
    %55 = vector.multi_reduction <add>, %54, %cst_31 [1] : vector<8x128xf32> to vector<8xf32>
    %56 = vector.shape_cast %55 : vector<8xf32> to vector<8x1xf32>
    %c1_32 = arith.constant 1 : index
    %c0_33 = arith.constant 0 : index
    %c0_34 = arith.constant 0 : index
    %57 = vector.load %arg4[%c1_32, %c0_33, %c0_34] : memref<2x8x1xf32, #tpu.memory_space<vmem>>, vector<1x8x1xf32>
    %58 = vector.shape_cast %57 : vector<1x8x1xf32> to vector<8x1xf32>
    %59 = vector.shape_cast %56 : vector<8x1xf32> to vector<1x8x1xf32>
    tpu.vector_store %arg4[%c1_32, %c0_33, %c0_34], %59 {strides = array<i32>} : memref<2x8x1xf32, #tpu.memory_space<vmem>>, vector<1x8x1xf32>,
    return
  }
  func.func @transform_0(%arg0: i32) -> (i32, i32, i32) {
    %c0_i32 = arith.constant 0 : i32
    %c0_i32_0 = arith.constant 0 : i32
    %c0_i32_1 = arith.constant 0 : i32
    return %arg0, %c0_i32, %c0_i32_0 : i32, i32, i32
  }
  func.func @transform_1(%arg0: i32) -> (i32, i32) {
    %c0_i32 = arith.constant 0 : i32
    %c0_i32_0 = arith.constant 0 : i32
    %c0_i32_1 = arith.constant 0 : i32
    return %c0_i32, %c0_i32_0 : i32, i32
  }
  func.func @transform_2(%arg0: i32) -> (i32, i32) {
    %c0_i32 = arith.constant 0 : i32
    %c0_i32_0 = arith.constant 0 : i32
    %c0_i32_1 = arith.constant 0 : i32
    return %c0_i32, %c0_i32_0 : i32, i32
  }
  func.func @transform_3(%arg0: i32) -> (i32, i32, i32) {
    %c0_i32 = arith.constant 0 : i32
    %c0_i32_0 = arith.constant 0 : i32
    %c0_i32_1 = arith.constant 0 : i32
    return %arg0, %c0_i32, %c0_i32_0 : i32, i32, i32
  }
  func.func @transform_4(%arg0: i32) -> (i32, i32, i32) {
    %c0_i32 = arith.constant 0 : i32
    %c0_i32_0 = arith.constant 0 : i32
    %c0_i32_1 = arith.constant 0 : i32
    return %arg0, %c0_i32, %c0_i32_0 : i32, i32, i32
  }
  func.func @transform_5(%arg0: i32) -> (i32, i32, i32) {
    %c0_i32 = arith.constant 0 : i32
    %c0_i32_0 = arith.constant 0 : i32
    %c0_i32_1 = arith.constant 0 : i32
    return %arg0, %c0_i32, %c0_i32_0 : i32, i32, i32
  }
}

</mosaic_0001>

<bundles_post_ra>
// kernel: att_block_forward.1
= control target key start
LH: loop header
LB: loop body
LE: loop exit
PB: predicated region body
PF: predicated region fallthrough
CT: control target
= control target key end

     0   :  { %11 = vsyncpa [#allocation3], 0  ;;  %s477_s0 = inlined_call_operand.hbm [shape: f32[2,32,128], index: 0, kind: input, shape index: {}]   ;;  %s478_s1 = inlined_call_operand.vmem [shape: f32[16,32], index: 1, kind: input, shape index: {}]   ;;  %s479_s2 = inlined_call_operand.vmem [shape: f32[16,1], index: 2, kind: input, shape index: {}]   ;;  %s480_s3 = inlined_call_operand.vmem [shape: f32[2,8,1], index: 3, kind: output, shape index: {0}]   ;;  %s481_s4 = inlined_call_operand.hbm [shape: f32[2,8,128], index: 4, kind: output, shape index: {1}]   ;;  %s482_s5 = inlined_call_operand.hbm [shape: f32[2,8,128], index: 5, kind: output, shape index: {2}]  }
   0x1   :  { %12 = vsyncpa [#allocation4], 0 }
   0x2   :  { %13 = vsyncpa [#allocation7], 0  ;;  %s405_s18 = smov [#allocation2]  }
   0x3   :  { %s19_s19 = sshll.u32 %s405_s18, 4  ;;  %s20_s19 = int_to_ptr.vmem [resolvable:$true] %s19_s19 }
   0x4   :  { %s347_s20 = scalar_lea.vmem %s20_s19, 1024  ;;  %p352_p1 = scmp.lt.s32.totalorder %s20_s19, %s20_s19 }
   0x5   :  { %p348_p0 = scmp.ne.s32.totalorder %s20_s19, %s347_s20  ;;  %p353_p2 = scmp.lt.s32.totalorder %s347_s20, %s347_s20 }
   0x7   :  { %p354_p3 = por %p353_p2, %p352_p1 }
   0x9   :  { %p355_p4 = pnand %p354_p3, %p348_p0 }
   0xb   :  { %358 = shalt.err (!%p355_p4)
}
   0xc   :  { %s406_s21 = smov 128   ;;  %s407_s22 = smov 8  }
   0xd   :  { %25 = dma.hbm_to_vmem [thread:$0]  %s477_s0, 1024, %s20_s19, [#allocation3], %s406_s21, %s406_s21, %s407_s22  }
   0xe   :  { %399 = dma.done.wait [#allocation3], 1024  }
   0xf   :  { %400 = vsyncadd [#allocation3], 4294966272  ;;  %v408_v0 = vmov 0   ;;  %v40_v1 = vld [vmem:[#allocation2 + $0x18] sm:$0xff]  ;;  %v39_v3 = vld [vmem:[#allocation2 + $0x10] sm:$0xff]  ;;  %vm51_vm0 = vcmask 261120  }
  0x10   :  { %329 = vset.pattern.permute.xlu0 %v408_v0  ;;  %330 = vset.pattern.permute.xlu1 %v408_v0  ;;  %v152_v2 = vld [vmem:[#allocation2 + $0x38] sm:$0xff]  ;;  %v151_v4 = vld [vmem:[#allocation2 + $0x30] sm:$0xff]  ;;  %v38_v5 = vld [vmem:[#allocation2 + $0x8] sm:$0xff]  ;;  %s410_s7 = smov [#allocation6]  }
  0x11   :  { %301 = vmatprep.subr.mxu0 %v40_v1  ;;  %312 = vmatprep.subr.mxu1 %v152_v2  ;;  %v150_v6 = vld [vmem:[#allocation2 + $0x28] sm:$0xff]  ;;  %v37_v7 = vld [vmem:[#allocation2] sm:$0xff]  ;;  %s264_s8 = sshll.u32 %s410_s7, 4  ;;  %s265_s8 = int_to_ptr.vmem [resolvable:$true] %s264_s8 }
  0x12   :  { %302 = vmatpush3.msra.mxu0 %v40_v1  ;;  %313 = vmatpush3.msra.mxu1 %v152_v2  ;;  %v149_v8 = vld [vmem:[#allocation2 + $0x20] sm:$0xff]  ;;  %v34_v10 = vld [vmem:[%s478_s1 + $0x8] sm:$0xff] }
  0x13   :  { %303 = vmatprep.subr.mxu0 %v39_v3  ;;  %314 = vmatprep.subr.mxu1 %v151_v4  ;;  %v33_v9 = vld [vmem:[%s478_s1] sm:$0xff]  ;;  %v36_v25 = vld [vmem:[%s479_s2 + $0x8] sm:$0xff] }
  0x14   :  { %304 = vmatpush3.msra.mxu0 %v39_v3  ;;  %315 = vmatpush3.msra.mxu1 %v151_v4  ;;  %v35_v11 = vld [vmem:[%s479_s2] sm:$0xff]  ;;  %s409_s2 = smov [#allocation5]  }
  0x15   :  { %305 = vmatprep.subr.mxu0 %v38_v5  ;;  %316 = vmatprep.subr.mxu1 %v150_v6  ;;  %s252_s6 = sshll.u32 %s409_s2, 4  ;;  %s253_s6 = int_to_ptr.vmem [resolvable:$true] %s252_s6 }
  0x16   :  { %306 = vmatpush3.msra.mxu0 %v38_v5  ;;  %317 = vmatpush3.msra.mxu1 %v150_v6  ;;  %s359_s9 = scalar_lea.vmem %s253_s6, 256  ;;  %p364_p6 = scmp.lt.s32.totalorder %s253_s6, %s253_s6 }
  0x17   :  { %307 = vmatprep.subr.mxu0 %v37_v7  ;;  %318 = vmatprep.subr.mxu1 %v149_v8  ;;  %p360_p5 = scmp.ne.s32.totalorder %s253_s6, %s359_s9  ;;  %p365_p7 = scmp.lt.s32.totalorder %s359_s9, %s359_s9 }
  0x18   :  { %308 = vmatpush3.msra.mxu0 %v37_v7  ;;  %309 = vmatprep.mubr.msk.f32.mxu0 %vm51_vm0, %v33_v9 }
  0x19   :  { %319 = vmatpush3.msra.mxu1 %v149_v8  ;;  %320 = vmatprep.mubr.msk.f32.mxu1 %vm51_vm0, %v33_v9  ;;  %p366_p8 = por %p365_p7, %p364_p6 }
  0x1a   :  { %310 = vmatmul.mubr.msk.f32.vlgmr.msra.gmra.mxu0 %vm51_vm0, %v34_v10  ;;  %321 = vmatmul.mubr.msk.f32.vlgmr.msra.gmra.mxu1 %vm51_vm0, %v34_v10 }
  0x1b   :  { %43 = vperm.xlu0 %329, %v35_v11   ;;  %p367_p9 = pnand %p366_p8, %p360_p5 }
  0x96   :  { %v44_v12 = vpop.permute.xlu0 %43 }
  0xda   :  { %v311_v13 = vpop.f32.mrf.mxu0  ;;  %v322_v14 = vpop.f32.mrf.mxu1 }
  0xdc   :  { %v124_v15 = vpop.f32.mrf.mxu0  ;;  %v219_v16 = vpop.f32.mrf.mxu1 }
  0xdd   :  { %v125_v17 = vadd.f32 %v124_v15, %v44_v12  ;;  %v220_v18 = vadd.f32 %v219_v16, %v44_v12 }
  0xdf   :  { %v284_v19 = vclamps-f32 %v125_v17, 10.0  ;;  %v287_v20 = vclamps-f32 %v220_v18, 10.0 }
  0xe1   :  { %v135_v21 = vmul.f32 1.442695, %v284_v19  ;;  %v230_v22 = vmul.f32 1.442695, %v287_v20 }
  0xe3   :  { %331 = vpow2.f32 %v135_v21 }
  0xe4   :  { %333 = vpow2.f32 %v230_v22 }
  0xf0   :  { %v332_v23 = vpop.eup %331 }
  0xf1   :  { %v334_v24 = vpop.eup %333  ;;  %137 = vadd.xlane.f32.xlu0 %v332_v23 }
  0xf2   :  { %232 = vadd.xlane.f32.xlu1 %v334_v24 }
 0x103   :  { %48 = vperm.xlu1 %330, %v36_v25  }
 0x17a   :  { %v138_v26 = vpop.xlane.xlu0 %137 }
 0x17b   :  { %v233_v27 = vpop.xlane.xlu1 %232  ;;  %335 = vrcp.f32 %v138_v26 }
 0x17c   :  { %337 = vrcp.f32 %v233_v27 }
 0x17f   :  { %v49_v28 = vpop.permute.xlu1 %48 }
 0x180   :  { %v130_v29 = vadd.f32 %v311_v13, %v49_v28  ;;  %v225_v30 = vadd.f32 %v322_v14, %v49_v28 }
 0x182   :  { %142 = vst [vmem:[#allocation6] sm:$0xff] %v130_v29  ;;  %239 = vst [vmem:[#allocation6 + $0x8] sm:$0xff] %v225_v30 }
 0x188   :  { %v336_v31 = vpop.eup %335 }
 0x189   :  { %v338_v32 = vpop.eup %337  ;;  %v140_v33 = vmul.f32 %v336_v31, %v332_v23 }
 0x18a   :  { %v235_v34 = vmul.f32 %v338_v32, %v334_v24 }
 0x18b   :  { %v143_v35 = vmul.f32 %v140_v33, %v130_v29  ;;  %141 = vst [vmem:[#allocation5] sm:$0xff] %v140_v33 }
 0x18c   :  { %v240_v36 = vmul.f32 %v235_v34, %v225_v30  ;;  %237 = vst [vmem:[#allocation5 + $0x8] sm:$0xff] %v235_v34 }
 0x18d   :  { %144 = vadd.xlane.f32.xlu1 %v143_v35 }
 0x18e   :  { %241 = vadd.xlane.f32.xlu0 %v240_v36 }
 0x18f   :  { %370 = shalt.err (!%p367_p9)
}
 0x190   :  { %258 = dma.vmem_to_hbm [thread:$0]  %s253_s6, 256, %s481_s4, [#allocation4], %s406_s21, %s406_s21, %s407_s22  }
 0x191   :  { %s379_s12 = scalar_lea.vmem %s265_s8, 256  ;;  %p384_p11 = scmp.lt.s32.totalorder %s265_s8, %s265_s8 }
 0x192   :  { %p380_p10 = scmp.ne.s32.totalorder %s265_s8, %s379_s12  ;;  %p385_p12 = scmp.lt.s32.totalorder %s379_s12, %s379_s12 }
 0x194   :  { %p386_p13 = por %p385_p12, %p384_p11 }
 0x196   :  { %p387_p0 = pnand %p386_p13, %p380_p10 }
 0x198   :  { %390 = shalt.err (!%p387_p0)
}
 0x199   :  { %270 = dma.vmem_to_hbm [thread:$0]  %s265_s8, 256, %s482_s5, [#allocation7], %s406_s21, %s406_s21, %s407_s22   ;;  %vm146_vm1 = vcmask 7168  }
 0x216   :  { %v145_v37 = vpop.xlane.xlu1 %144 }
 0x217   :  { %147 = vst.msk [vmem:[%s480_s3] sm:$0xff] %vm146_vm1, %v145_v37  ;;  %v242_v38 = vpop.xlane.xlu0 %241 }
 0x218   :  { %288 = vst.msk [vmem:[%s480_s3 + $0x8] sm:$0xff] %vm146_vm1, %v242_v38 }
 0x219   :  { %401 = dma.done.wait [#allocation4], 256  }
 0x21a   :  { %402 = vsyncadd [#allocation4], 4294967040 }
 0x21b   :  { %403 = dma.done.wait [#allocation7], 256  }
 0x21c   :  { %404 = vsyncadd [#allocation7], 4294967040 }
 0x21d   :  { %279 = vsyncpa [#allocation3], 1 }
 0x21e   :  { %280 = vsyncpa [#allocation4], 1 }
 0x21f   :  { %281 = vsyncpa [#allocation7], 1 }

</bundles_post_ra>
